<compile_context>
chip_gen: v7x
topology: tpu7x:2x2x1
jax: 0.10.0
libtpu: 0.0.40
codegen_flags: <defaults>
</compile_context>

<pallas_src>
import functools

import jax
import jax.numpy as jnp
from jax.experimental import pallas as pl
from jax.experimental.pallas import tpu as pltpu


def _one_to_many_kernel(x_ref, w_in_cat_ref, w_cat_ref, bias_cat_ref,
                        ys_ref, h_out_ref, *, max_iter, h0_is_zero,
                        hidden_size, input_size):
    """Entire unrolled one-to-many RNN forward in one kernel invocation.

    x_ref:        (B, I)  if h0_is_zero else (B, I+H)   [x | h0]
    w_in_cat_ref: (I+H, H)   stacked [W_ih^T ; W_hh^T]
    w_cat_ref:    (H, H+I)   concatenated [W_hh^T | W_fc^T]
    bias_cat_ref: (1, H+I)   concatenated [b_ih + b_hh | b_fc]
    ys_ref:       (T, B, I)  stacked relu(fc(h)) outputs
    h_out_ref:    (B, H)     final hidden state (h at step T-1)
    """
    H, I = hidden_size, input_size

    w_cat = w_cat_ref[...]                 # (H, H+I)
    bias_cat = bias_cat_ref[...]           # (1, H+I)
    bias_h = bias_cat[:, :H]               # b_ih + b_hh (zero-offset slice, free)

    # ---- step 0: one fused MXU pass for the pre-activation of h_0 ----------
    if h0_is_zero:
        # Zero initial hidden state => only x contributes; use the top I rows
        # of the stacked input weight (zero-offset sublane slice, free).
        w_in = w_in_cat_ref[:I, :]
    else:
        w_in = w_in_cat_ref[...]
    pre0 = jnp.dot(x_ref[...], w_in, preferred_element_type=jnp.float32)
    h = jnp.tanh(pre0 + bias_h)            # h_0

    # ---- steps 0..T-1: ONE fused MXU pass per step --------------------------
    ys = []
    for i in range(max_iter):              # static Python unroll, max_iter small
        out = jnp.dot(h, w_cat, preferred_element_type=jnp.float32) + bias_cat
        # fc + relu branch (lanes H:H+I) — off the recurrent critical chain.
        ys.append(jnp.maximum(out[:, H:], 0.0))
        if i < max_iter - 1:
            # recurrence (lanes :H, zero-offset static slice).
            h = jnp.tanh(out[:, :H])

    # Single contiguous store of all T outputs instead of T partial stores.
    ys_ref[...] = jnp.stack(ys).astype(ys_ref.dtype)
    h_out_ref[...] = h.astype(h_out_ref.dtype)


def preprocess_params(params):
    """One-time parameter preprocessing (keep OUT of the per-call path)."""
    w_ih, w_hh, b_ih, b_hh, w_fc, b_fc = (
        params["w_ih"], params["w_hh"], params["b_ih"],
        params["b_hh"], params["w_fc"], params["b_fc"])
    H, I = w_ih.shape
    w_in_cat = jnp.concatenate([w_ih.T, w_hh.T], axis=0)          # (I+H, H)
    w_cat = jnp.concatenate([w_hh.T, w_fc.T], axis=1)             # (H, H+I)
    bias_cat = jnp.concatenate([b_ih + b_hh, b_fc]).reshape(1, H + I)
    return {
        "w_in_cat": jnp.asarray(w_in_cat, jnp.float32),
        "w_cat": jnp.asarray(w_cat, jnp.float32),
        "bias_cat": jnp.asarray(bias_cat, jnp.float32),
    }


def one_to_many_rnn(x, h0, prep, *, max_iter=3):
    """JAX wrapper. x: (B, I) f32, h0: (B, H) f32 or None, prep from preprocess_params."""
    B, I = x.shape
    H = prep["w_cat"].shape[0]

    h0_is_zero = h0 is None
    # Non-default path only: fuse [x | h0] so step 0 is a single MXU pass.
    x_in = x if h0_is_zero else jnp.concatenate([x, h0], axis=1)   # (B, I[+H])

    vmem = pl.BlockSpec(memory_space=pltpu.MemorySpace.VMEM)
    kernel = functools.partial(_one_to_many_kernel,
                               max_iter=max_iter, h0_is_zero=h0_is_zero,
                               hidden_size=H, input_size=I)

    ys, h_out = pl.pallas_call(
        kernel,
        out_shape=(
            jax.ShapeDtypeStruct((max_iter, B, I), jnp.float32),
            jax.ShapeDtypeStruct((B, H), jnp.float32),
        ),
        in_specs=[vmem] * 4,
        out_specs=(vmem, vmem),
    )(x_in, prep["w_in_cat"], prep["w_cat"], prep["bias_cat"])
    return ys, h_out


def init_params(key, input_size, hidden_size):
    """Deterministic init mimicking PyTorch's U(-1/sqrt(H), 1/sqrt(H))."""
    ks = jax.random.split(key, 6)
    s = 1.0 / jnp.sqrt(jnp.float32(hidden_size))
    u = lambda k, shape: jax.random.uniform(k, shape, jnp.float32, -s, s)
    return {
        "w_ih": u(ks[0], (hidden_size, input_size)),
        "w_hh": u(ks[1], (hidden_size, hidden_size)),
        "b_ih": u(ks[2], (hidden_size,)),
        "b_hh": u(ks[3], (hidden_size,)),
        "w_fc": u(ks[4], (input_size, hidden_size)),
        "b_fc": u(ks[5], (input_size,)),
    }


def _reference(x, h0, params, max_iter=3):
    """Pure-JAX reference matching the PyTorch forward."""
    B = x.shape[0]
    H = params["w_ih"].shape[0]
    h = jnp.zeros((B, H), jnp.float32) if h0 is None else h0
    outs = []
    for i in range(max_iter):
        h = jnp.tanh(x @ params["w_ih"].T + params["b_ih"]
                     + h @ params["w_hh"].T + params["b_hh"])
        y = jnp.maximum(h @ params["w_fc"].T + params["b_fc"], 0.0)
        outs.append(y)
        if i == 0:
            x = jnp.zeros_like(x)
    return jnp.stack(outs), h


if __name__ == "__main__":
    B, I, H, T = 4, 16, 32, 3
    key = jax.random.PRNGKey(0)
    kx, kh, kp = jax.random.split(key, 3)

    x = jax.random.normal(kx, (B, I), jnp.float32)
    params = init_params(kp, I, H)
    prep = preprocess_params(params)          # one-time, outside per-call path

    # Default path: h=None (module default) -> zero hidden; no h0 array is
    # materialized or DMA'd, step 0 uses only the W_ih^T rows of w_in_cat.
    ys, h_out = one_to_many_rnn(x, None, prep, max_iter=T)
    jax.block_until_ready((ys, h_out))
    ys_ref, h_ref = _reference(x, None, params, max_iter=T)
    assert ys.shape == (T, B, I) and h_out.shape == (B, H)
    assert jnp.allclose(ys, ys_ref, atol=1e-5, rtol=1e-5)
    assert jnp.allclose(h_out, h_ref, atol=1e-5, rtol=1e-5)

    # Non-zero initial hidden state path: fused [x | h0] step-0 matmul.
    h0 = jax.random.normal(kh, (B, H), jnp.float32)
    ys2, h_out2 = one_to_many_rnn(x, h0, prep, max_iter=T)
    jax.block_until_ready((ys2, h_out2))
    ys2_ref, h2_ref = _reference(x, h0, params, max_iter=T)
    assert jnp.allclose(ys2, ys2_ref, atol=1e-5, rtol=1e-5)
    assert jnp.allclose(h_out2, h2_ref, atol=1e-5, rtol=1e-5)

    print("KERNEL_OK")
</pallas_src>

<mosaic_0001>
module attributes {stable_mosaic.version = 11 : i64} {
  func.func @_one_to_many_kernel(%arg0: memref<4x16xf32, #tpu.memory_space<vmem>>, %arg1: memref<48x32xf32, #tpu.memory_space<vmem>>, %arg2: memref<32x48xf32, #tpu.memory_space<vmem>>, %arg3: memref<1x48xf32, #tpu.memory_space<vmem>>, %arg4: memref<3x4x16xf32, #tpu.memory_space<vmem>>, %arg5: memref<4x32xf32, #tpu.memory_space<vmem>>) attributes {dimension_semantics = [], scalar_prefetch = 0 : i64, scratch_operands = 0 : i64, tpu.core_type = #tpu.core_type<tc>} {
    %c0 = arith.constant 0 : index
    %c0_0 = arith.constant 0 : index
    %0 = vector.load %arg2[%c0, %c0_0] : memref<32x48xf32, #tpu.memory_space<vmem>>, vector<32x48xf32>
    %c0_1 = arith.constant 0 : index
    %c0_2 = arith.constant 0 : index
    %1 = vector.load %arg3[%c0_1, %c0_2] : memref<1x48xf32, #tpu.memory_space<vmem>>, vector<1x48xf32>
    %2 = vector.extract_strided_slice %1 {offsets = [0, 0], sizes = [1, 32], strides = [1, 1]} : vector<1x48xf32> to vector<1x32xf32>
    %c0_3 = arith.constant 0 : index
    %c0_4 = arith.constant 0 : index
    %3 = vector.load %arg1[%c0_3, %c0_4] : memref<48x32xf32, #tpu.memory_space<vmem>>, vector<16x32xf32>
    %c0_5 = arith.constant 0 : index
    %c0_6 = arith.constant 0 : index
    %4 = vector.load %arg0[%c0_5, %c0_6] : memref<4x16xf32, #tpu.memory_space<vmem>>, vector<4x16xf32>
    %cst = arith.constant dense<0.000000e+00> : vector<4x32xf32>
    %5 = tpu.matmul %4, %3, %cst {dimension_numbers = #tpu.dot_dimension_numbers<[1], [0], [0], [1], [0, 0, 1, 1], [], []>} : vector<4x16xf32>, vector<16x32xf32>, vector<4x32xf32> -> vector<4x32xf32>
    %6 = vector.broadcast %2 : vector<1x32xf32> to vector<4x32xf32>
    %7 = arith.addf %5, %6 : vector<4x32xf32>
    %8 = math.tanh %7 : vector<4x32xf32>
    %cst_7 = arith.constant dense<0.000000e+00> : vector<4x48xf32>
    %9 = tpu.matmul %8, %0, %cst_7 {dimension_numbers = #tpu.dot_dimension_numbers<[1], [0], [0], [1], [0, 0, 1, 1], [], []>} : vector<4x32xf32>, vector<32x48xf32>, vector<4x48xf32> -> vector<4x48xf32>
    %10 = vector.broadcast %1 : vector<1x48xf32> to vector<4x48xf32>
    %11 = arith.addf %9, %10 : vector<4x48xf32>
    %12 = vector.extract_strided_slice %11 {offsets = [0, 32], sizes = [4, 16], strides = [1, 1]} : vector<4x48xf32> to vector<4x16xf32>
    %cst_8 = arith.constant 0.000000e+00 : f32
    %13 = vector.broadcast %cst_8 : f32 to vector<4x16xf32>
    %14 = arith.maximumf %12, %13 : vector<4x16xf32>
    %15 = vector.extract_strided_slice %11 {offsets = [0, 0], sizes = [4, 32], strides = [1, 1]} : vector<4x48xf32> to vector<4x32xf32>
    %16 = math.tanh %15 : vector<4x32xf32>
    %cst_9 = arith.constant dense<0.000000e+00> : vector<4x48xf32>
    %17 = tpu.matmul %16, %0, %cst_9 {dimension_numbers = #tpu.dot_dimension_numbers<[1], [0], [0], [1], [0, 0, 1, 1], [], []>} : vector<4x32xf32>, vector<32x48xf32>, vector<4x48xf32> -> vector<4x48xf32>
    %18 = vector.broadcast %1 : vector<1x48xf32> to vector<4x48xf32>
    %19 = arith.addf %17, %18 : vector<4x48xf32>
    %20 = vector.extract_strided_slice %19 {offsets = [0, 32], sizes = [4, 16], strides = [1, 1]} : vector<4x48xf32> to vector<4x16xf32>
    %cst_10 = arith.constant 0.000000e+00 : f32
    %21 = vector.broadcast %cst_10 : f32 to vector<4x16xf32>
    %22 = arith.maximumf %20, %21 : vector<4x16xf32>
    %23 = vector.extract_strided_slice %19 {offsets = [0, 0], sizes = [4, 32], strides = [1, 1]} : vector<4x48xf32> to vector<4x32xf32>
    %24 = math.tanh %23 : vector<4x32xf32>
    %cst_11 = arith.constant dense<0.000000e+00> : vector<4x48xf32>
    %25 = tpu.matmul %24, %0, %cst_11 {dimension_numbers = #tpu.dot_dimension_numbers<[1], [0], [0], [1], [0, 0, 1, 1], [], []>} : vector<4x32xf32>, vector<32x48xf32>, vector<4x48xf32> -> vector<4x48xf32>
    %26 = vector.broadcast %1 : vector<1x48xf32> to vector<4x48xf32>
    %27 = arith.addf %25, %26 : vector<4x48xf32>
    %28 = vector.extract_strided_slice %27 {offsets = [0, 32], sizes = [4, 16], strides = [1, 1]} : vector<4x48xf32> to vector<4x16xf32>
    %cst_12 = arith.constant 0.000000e+00 : f32
    %29 = vector.broadcast %cst_12 : f32 to vector<4x16xf32>
    %30 = arith.maximumf %28, %29 : vector<4x16xf32>
    %31 = vector.shape_cast %14 : vector<4x16xf32> to vector<1x4x16xf32>
    %32 = vector.shape_cast %22 : vector<4x16xf32> to vector<1x4x16xf32>
    %33 = vector.shape_cast %30 : vector<4x16xf32> to vector<1x4x16xf32>
    %34 = tpu.concatenate %31, %32, %33 in 0 : vector<1x4x16xf32>, vector<1x4x16xf32>, vector<1x4x16xf32> -> vector<3x4x16xf32>
    %c0_13 = arith.constant 0 : index
    %c0_14 = arith.constant 0 : index
    %c0_15 = arith.constant 0 : index
    %35 = vector.load %arg4[%c0_13, %c0_14, %c0_15] : memref<3x4x16xf32, #tpu.memory_space<vmem>>, vector<3x4x16xf32>
    tpu.vector_store %arg4[%c0_13, %c0_14, %c0_15], %34 {strides = array<i32>} : memref<3x4x16xf32, #tpu.memory_space<vmem>>, vector<3x4x16xf32>,
    %c0_16 = arith.constant 0 : index
    %c0_17 = arith.constant 0 : index
    %36 = vector.load %arg5[%c0_16, %c0_17] : memref<4x32xf32, #tpu.memory_space<vmem>>, vector<4x32xf32>
    tpu.vector_store %arg5[%c0_16, %c0_17], %24 {strides = array<i32>} : memref<4x32xf32, #tpu.memory_space<vmem>>, vector<4x32xf32>,
    return
  }
}

</mosaic_0001>

<bundles_post_ra>
// kernel: tpu_custom_call.1
= control target key start
LH: loop header
LB: loop body
LE: loop exit
PB: predicated region body
PF: predicated region fallthrough
CT: control target
= control target key end

     0   :  { %11 = vsyncpa [#allocation3], 0  ;;  %v529_v2 = vmov 0.0|0.0   ;;  %vm530_vm0 = vmmov 0   ;;  %v531_v4 = vmov 0.0   ;;  %s628_s0 = inlined_call_operand.vmem [shape: f32[4,16], index: 0, kind: input, shape index: {}]   ;;  %s629_s1 = inlined_call_operand.vmem [shape: f32[48,32], index: 1, kind: input, shape index: {}]   ;;  %s630_s2 = inlined_call_operand.vmem [shape: f32[32,48], index: 2, kind: input, shape index: {}]   ;;  %s631_s3 = inlined_call_operand.vmem [shape: f32[1,48], index: 3, kind: input, shape index: {}]   ;;  %s632_s4 = inlined_call_operand.hbm [shape: f32[3,4,16], index: 4, kind: output, shape index: {0}]   ;;  %s633_s5 = inlined_call_operand.hbm [shape: f32[4,32], index: 5, kind: output, shape index: {1}]  }
   0x1   :  { %v26_v0 = vld [vmem:[%s629_s1] sm:$0xff]  ;;  %v27_v1 = vld [vmem:[%s629_s1 + $0x8] sm:$0xff]  ;;  %446 = vmatprep.subr.bf16.mxu0 %v529_v2  ;;  %410 = vmatprep.mubr.msk.f32.mxu0 %vm530_vm0, %v531_v4 }
   0x2   :  { %v447_v3 = vpack.c.bf16 %v27_v1, %v26_v0 }
   0x3   :  { %12 = vsyncpa [#allocation5], 0  ;;  %449 = vmatprep.subr.bf16.mxu1 %v529_v2  ;;  %421 = vmatprep.mubr.msk.f32.mxu1 %vm530_vm0, %v531_v4  ;;  %v28_v5 = vld [vmem:[%s628_s0] sm:$0xf]  ;;  %vm35_vm1 = vcmask 130048   ;;  %v22_v7 = vld [vmem:[%s630_s2 + $0x8] sm:$0xff] }
   0x4   :  { %448 = vmatpush3.bf16.msra.mxu0 %v447_v3  ;;  %v21_v6 = vld [vmem:[%s630_s2] sm:$0xff]  ;;  %v23_v8 = vld [vmem:[%s630_s2 + $0x10] sm:$0xff]  ;;  %v24_v10 = vld [vmem:[%s630_s2 + $0x18] sm:$0xff]  ;;  %vm110_vm2 = vcmask 261120   ;;  %s532_s2 = smov 96   ;;  %vm347_vm3 = vcmask 125952  }
   0x5   :  { %455 = vmatprep.subr.bf16.mxu0 %v529_v2  ;;  %v450_v9 = vpack.c.bf16 %v22_v7, %v21_v6  ;;  %v453_v11 = vpack.c.bf16 %v24_v10, %v23_v8  ;;  %v383_v12 = vld [vmem:[%s631_s3] ss:$0 sm:$0xff]  ;;  %vm351_vm4 = vcmask 257024   ;;  %s533_s3 = smov [#allocation4]  }
   0x6   :  { %s371_s7 = sshll.u32 %s533_s3, 4  ;;  %s372_s7 = int_to_ptr.vmem [resolvable:$true] %s371_s7 }
   0x7   :  { %411 = vmatmul.mubr.msk.f32.vlgmr.msra.gmra.mrb[0].mxu0 %vm35_vm1, %v28_v5  ;;  %451 = vmatpush3.bf16.msra.mxu1 %v450_v9  ;;  %s481_s8 = scalar_lea.vmem %s372_s7, 64  ;;  %p486_p1 = scmp.lt.s32.totalorder %s372_s7, %s372_s7 }
   0x8   :  { %432 = vmatprep.mubr.msk.f32.mxu0 %vm530_vm0, %v531_v4  ;;  %457 = vmatpush3.bf16.msra.mxu0 %v450_v9  ;;  %p482_p0 = scmp.ne.s32.totalorder %s372_s7, %s481_s8  ;;  %p487_p2 = scmp.lt.s32.totalorder %s481_s8, %s481_s8 }
   0x9   :  { %452 = vmatprep.subr.bf16.mxu1 %v529_v2  ;;  %458 = vmatprep.subr.bf16.mxu0 %v529_v2 }
   0xa   :  { %p488_p3 = por %p487_p2, %p486_p1 }
   0xb   :  { %454 = vmatpush3.bf16.msra.mxu1 %v453_v11 }
   0xc   :  { %460 = vmatpush3.bf16.msra.mxu0 %v453_v11  ;;  %461 = vmatprep.subr.bf16.mxu1 %v529_v2  ;;  %p489_p4 = pnand %p488_p3, %p482_p0 }
  0xda   :  { %v105_v13 = vpop.f32.mrb[0].mxu0 }
  0xdb   :  { %v106_v14 = vadd.f32 %v383_v12, %v105_v13  ;;  %v412_v15 = vpop.f32.mrb[1].mxu0 }
  0xdd   :  { %475 = vtanh.f32 %v106_v14 }
  0xe7   :  { %v476_v16 = vpop.eup %475 }
  0xe8   :  { %422 = vmatmul.mubr.msk.f32.vlgmr.msra.gmra.mrb[0].mxu1 %vm110_vm2, %v476_v16 }
  0xe9   :  { %463 = vmatpush3.bf16.msra.mxu1 %v450_v9  ;;  %443 = vmatprep.mubr.msk.f32.mxu1 %vm530_vm0, %v531_v4 }
  0xea   :  { %464 = vmatprep.subr.bf16.mxu1 %v529_v2 }
  0xed   :  { %466 = vmatpush3.bf16.msra.mxu1 %v453_v11 }
 0x1bb   :  { %v180_v17 = vpop.f32.mrb[0].mxu1 }
 0x1bc   :  { %v181_v18 = vadd.f32 %v383_v12, %v180_v17  ;;  %v423_v19 = vpop.f32.mrb[1].mxu1 }
 0x1be   :  { %477 = vtanh.f32 %v181_v18  ;;  %v184_v20 = vmax.f32 %v181_v18, 0.0 }
 0x1c0   :  { %338 = vrot.lane.b32.xlu0 %v184_v20, %s532_s2 }
 0x1c8   :  { %v478_v21 = vpop.eup %477 }
 0x1c9   :  { %433 = vmatmul.mubr.msk.f32.vlgmr.msra.gmra.mrb[2].mxu0 %vm110_vm2, %v478_v21 }
 0x232   :  { %v339_v22 = vpop.permute.xlu0 %338 }
 0x233   :  { %348 = vst.msk [vmem:[#allocation2] sm:$0xf] %vm347_vm3, %v339_v22 }
 0x29c   :  { %v255_v23 = vpop.f32.mrb[2].mxu0 }
 0x29d   :  { %v256_v24 = vadd.f32 %v383_v12, %v255_v23  ;;  %v434_v25 = vpop.f32.mrb[3].mxu0 }
 0x29f   :  { %v259_v26 = vmax.f32 %v256_v24, 0.0  ;;  %479 = vtanh.f32 %v256_v24 }
 0x2a1   :  { %340 = vrot.lane.b32.xlu0 %v259_v26, %s532_s2 }
 0x2a9   :  { %v480_v27 = vpop.eup %479 }
 0x2aa   :  { %444 = vmatmul.mubr.msk.f32.vlgmr.msra.gmra.mrb[2].mxu1 %vm110_vm2, %v480_v27  ;;  %352 = vst.msk [vmem:[#allocation4] sm:$0xf] %vm351_vm4, %v480_v27 }
 0x313   :  { %v341_v28 = vpop.permute.xlu0 %340 }
 0x314   :  { %349 = vst.msk [vmem:[#allocation2 + $0x4] sm:$0xf] %vm347_vm3, %v341_v28 }
 0x315   :  { %492 = shalt.err (!%p489_p4)
}
 0x316   :  { %s493_s11 = scalar_lea.hbm %s633_s5, 64 }
 0x317   :  { %p494_p5 = scmp.ne.s32.totalorder %s633_s5, %s493_s11  ;;  %p497_p6 = scmp.lt.u32.totalorder %s493_s11, %s633_s5 }
 0x319   :  { %p499_p7 = pnand %p497_p6, %p494_p5 }
 0x31b   :  { %502 = shalt.err (!%p499_p7)
}
 0x31c   :  { %374 = dma.vmem_to_hbm [thread:$0]  %s372_s7, 64, %s633_s5, [#allocation5]  }
 0x31d   :  { %s534_s18 = smov [#allocation2]  }
 0x31e   :  { %s358_s19 = sshll.u32 %s534_s18, 4  ;;  %s359_s19 = int_to_ptr.vmem [resolvable:$true] %s358_s19 }
 0x31f   :  { %s503_s20 = scalar_lea.vmem %s359_s19, 192  ;;  %p508_p9 = scmp.lt.s32.totalorder %s359_s19, %s359_s19 }
 0x320   :  { %p504_p8 = scmp.ne.s32.totalorder %s359_s19, %s503_s20  ;;  %p509_p10 = scmp.lt.s32.totalorder %s503_s20, %s503_s20 }
 0x322   :  { %p510_p11 = por %p509_p10, %p508_p9 }
 0x324   :  { %p511_p12 = pnand %p510_p11, %p504_p8 }
 0x37d   :  { %v330_v29 = vpop.f32.mrb[2].mxu1 }
 0x37e   :  { %v331_v30 = vadd.f32 %v383_v12, %v330_v29  ;;  %v445_v31 = vpop.f32.mrb[3].mxu1 }
 0x380   :  { %v334_v32 = vmax.f32 %v331_v30, 0.0 }
 0x382   :  { %342 = vrot.lane.b32.xlu1 %v334_v32, %s532_s2 }
 0x3f4   :  { %v343_v33 = vpop.permute.xlu1 %342 }
 0x3f5   :  { %350 = vst.msk [vmem:[#allocation2 + $0x8] sm:$0xf] %vm347_vm3, %v343_v33 }
 0x3f6   :  { %514 = shalt.err (!%p511_p12)
}
 0x3f7   :  { %s515_s22 = scalar_lea.hbm %s632_s4, 192 }
 0x3f8   :  { %p516_p13 = scmp.ne.s32.totalorder %s632_s4, %s515_s22  ;;  %p519_p0 = scmp.lt.u32.totalorder %s515_s22, %s632_s4 }
 0x3fa   :  { %p521_p1 = pnand %p519_p0, %p516_p13 }
 0x3fc   :  { %524 = shalt.err (!%p521_p1)
}
 0x3fd   :  { %s535_s26 = smov 64   ;;  %s536_s27 = smov 4  }
 0x3fe   :  { %364 = dma.vmem_to_hbm [thread:$0]  %s359_s19, 192, %s632_s4, [#allocation3], %s535_s26, %s535_s26, %s536_s27  }
 0x3ff   :  { %525 = dma.done.wait [#allocation3], 192  }
 0x400   :  { %526 = vsyncadd [#allocation3], 4294967104 }
 0x401   :  { %527 = dma.done.wait [#allocation5], 64  }
 0x402   :  { %528 = vsyncadd [#allocation5], 4294967232 }
 0x403   :  { %381 = vsyncpa [#allocation3], 1 }
 0x404   :  { %382 = vsyncpa [#allocation5], 1 }

</bundles_post_ra>
